<compile_context>
chip_gen: v7x
topology: tpu7x:2x2x1
jax: 0.10.0
libtpu: 0.0.40
codegen_flags: <defaults>
</compile_context>

<pallas_src>
import functools

import jax
import jax.numpy as jnp
from jax.experimental import pallas as pl
from jax.experimental.pallas import tpu as pltpu

LANE = 128


def _round_up(x, m):
    return ((x + m - 1) // m) * m


# ------------------------- fused multi-layer kernel ------------------------ #
def fused_gcn_kernel(a_ref, h0_ref, w_ref, b_ref, mask_ref, o_ref,
                     h_scr, hw_scr, *, row_tile):
    """grid = (layer, row_tile).  One step = one row tile of one layer.

    a_ref    (row_tile, N) bf16  A_hat row block (resident if row_tile == N)
    h0_ref   (N, F)        f32   padded input features (resident)
    w_ref    (1, F, F)     f32   this layer's padded weight
    b_ref    (1, 1, F)     f32   this layer's padded bias
    mask_ref (1, N, F)     f32   this layer's dropout mask (0 or 1/(1-p))
    o_ref    (N, F)        f32   padded output (resident; written on last layer)
    h_scr    (N, F)        f32   VMEM scratch: activation carried across layers
    hw_scr   (N, F)        f32   VMEM scratch: dropout(H) @ W of current layer
    """
    layer = pl.program_id(0)
    rt = pl.program_id(1)
    n_layers = pl.num_programs(0)

    # Very first grid step: seed the carried activation with the input features.
    @pl.when(jnp.logical_and(layer == 0, rt == 0))
    def _():
        h_scr[...] = h0_ref[...]

    # Once per layer: project the full (dropped-out) activation.  This runs
    # before any row of h_scr is overwritten below, so h_scr can serve as both
    # this layer's input and output buffer.
    @pl.when(rt == 0)
    def _():
        h_drop = h_scr[...] * mask_ref[0]
        hw_scr[...] = jnp.dot(h_drop, w_ref[0],
                              preferred_element_type=jnp.float32)

    # Aggregate this row tile on the MXU: relu(A_hat[rows] @ (H W) + b).
    agg = jnp.dot(a_ref[...], hw_scr[...].astype(jnp.bfloat16),
                  preferred_element_type=jnp.float32)
    rows = jnp.maximum(agg + b_ref[0], 0.0)

    row0 = rt * row_tile
    h_scr[pl.ds(row0, row_tile), :] = rows          # input of the next layer

    @pl.when(layer == n_layers - 1)
    def _():
        o_ref[pl.ds(row0, row_tile), :] = rows


# ------------------------------ host wrapper ------------------------------- #
def _pick_row_tile(n):
    # Keep A_hat fully VMEM-resident (loaded once for the whole forward) when
    # small; otherwise stream (row_tile, N) blocks so VMEM stays bounded.
    if n * n * 2 <= 4 * 1024 * 1024:        # bf16 A_hat <= 4 MiB
        return n
    for t in (512, 256, 128, 64, 32, 16):   # bf16 sublane pack -> multiple of 16
        if n % t == 0:
            return t
    return n  # TODO(synk): pad N to a tile multiple for ragged graph sizes


@functools.partial(jax.jit, static_argnames=("dropout_p", "row_tile"))
def gcn_encoder_forward(a_hat, features, params, key, dropout_p, row_tile=None):
    """params: list of (W_i, b_i).  Returns (N, out_size) activations."""
    n = features.shape[0]
    dims = [features.shape[1]] + [w.shape[1] for w, _ in params]
    out_size = dims[-1]
    f_pad = _round_up(max(dims + [LANE]), LANE)
    n_layers = len(params)

    if row_tile is None:
        row_tile = _pick_row_tile(n)
    assert n % row_tile == 0

    # Lane-dense zero padding of every operand to f_pad (= multiple of 128).
    h0 = jnp.zeros((n, f_pad), jnp.float32).at[:, :dims[0]].set(
        features.astype(jnp.float32))
    w_stack = jnp.stack([
        jnp.zeros((f_pad, f_pad), jnp.float32).at[:w.shape[0], :w.shape[1]].set(w)
        for w, _ in params])
    b_stack = jnp.stack([
        jnp.zeros((1, f_pad), jnp.float32).at[0, :b.shape[0]].set(b)
        for _, b in params])

    # Training-mode (inverted) dropout masks, one per layer (dropout is applied
    # before every layer, exactly like the PyTorch forward loop).
    if dropout_p > 0.0:
        keep = jax.random.bernoulli(key, 1.0 - dropout_p, (n_layers, n, f_pad))
        masks = jnp.where(keep, 1.0 / (1.0 - dropout_p), 0.0).astype(jnp.float32)
    else:
        masks = jnp.ones((n_layers, n, f_pad), jnp.float32)

    a_bf16 = a_hat.astype(jnp.bfloat16)

    kernel = functools.partial(fused_gcn_kernel, row_tile=row_tile)
    out_pad = pl.pallas_call(
        kernel,
        out_shape=jax.ShapeDtypeStruct((n, f_pad), jnp.float32),
        grid=(n_layers, n // row_tile),
        in_specs=[
            pl.BlockSpec((row_tile, n), lambda l, r: (r, 0)),          # A_hat
            pl.BlockSpec((n, f_pad), lambda l, r: (0, 0)),             # H0
            pl.BlockSpec((1, f_pad, f_pad), lambda l, r: (l, 0, 0)),   # W_l
            pl.BlockSpec((1, 1, f_pad), lambda l, r: (l, 0, 0)),       # b_l
            pl.BlockSpec((1, n, f_pad), lambda l, r: (l, 0, 0)),       # mask_l
        ],
        out_specs=pl.BlockSpec((n, f_pad), lambda l, r: (0, 0)),
        scratch_shapes=[
            pltpu.VMEM((n, f_pad), jnp.float32),   # carried activation H
            pltpu.VMEM((n, f_pad), jnp.float32),   # dropout(H) @ W
        ],
        compiler_params=pltpu.CompilerParams(
            dimension_semantics=("arbitrary", "arbitrary")),
    )(a_bf16, h0, w_stack, b_stack, masks)

    return out_pad[:, :out_size]


# ----------------------------- parameter init ------------------------------ #
def init_gcn_encoder_params(key, in_size, hid_size, out_size, num_layers):
    """Xavier-uniform weights + zero biases (DGL GraphConv init)."""
    dims = [in_size] + [hid_size] * (num_layers - 1) + [out_size]
    params = []
    for li in range(num_layers):
        fan_in, fan_out = dims[li], dims[li + 1]
        key, sub = jax.random.split(key)
        bound = (6.0 / (fan_in + fan_out)) ** 0.5
        w = jax.random.uniform(sub, (fan_in, fan_out), jnp.float32, -bound, bound)
        b = jnp.zeros((fan_out,), jnp.float32)
        params.append((w, b))
    return params


def build_normalized_adjacency(key, num_nodes, extra_edges=64):
    """Synthetic undirected graph: ring + random edges; A_hat = D^-1/2 A D^-1/2."""
    a = jnp.zeros((num_nodes, num_nodes), jnp.float32)
    idx = jnp.arange(num_nodes)
    a = a.at[idx, (idx + 1) % num_nodes].set(1.0)
    a = a.at[(idx + 1) % num_nodes, idx].set(1.0)
    k1, k2 = jax.random.split(key)
    src = jax.random.randint(k1, (extra_edges,), 0, num_nodes)
    dst = jax.random.randint(k2, (extra_edges,), 0, num_nodes)
    a = a.at[src, dst].set(1.0)
    a = a.at[dst, src].set(1.0)
    a = a * (1.0 - jnp.eye(num_nodes, dtype=jnp.float32))  # no self loops
    deg = jnp.clip(a.sum(axis=1), 1.0, None)
    d_inv_sqrt = 1.0 / jnp.sqrt(deg)
    return a * d_inv_sqrt[:, None] * d_inv_sqrt[None, :]


# --------------------------------- main ------------------------------------ #
if __name__ == "__main__":
    N = 64
    IN_SIZE, HID_SIZE, OUT_SIZE = 32, 64, 32
    NUM_LAYERS = 3
    DROPOUT = 0.5

    key = jax.random.PRNGKey(0)
    k_graph, k_feat, k_params, k_drop = jax.random.split(key, 4)

    a_hat = build_normalized_adjacency(k_graph, N)
    features = jax.random.normal(k_feat, (N, IN_SIZE), jnp.float32)
    params = init_gcn_encoder_params(k_params, IN_SIZE, HID_SIZE, OUT_SIZE, NUM_LAYERS)

    # Default path: A_hat fully resident (loaded once for all layers).
    out = gcn_encoder_forward(a_hat, features, params, k_drop, dropout_p=DROPOUT)
    out = jax.block_until_ready(out)

    assert out.shape == (N, OUT_SIZE)
    assert jnp.all(jnp.isfinite(out))
    assert jnp.all(out >= 0.0)  # final ReLU

    # Also exercise the streamed (row-tiled A_hat) path used for large graphs
    # and check it matches the resident path.
    out_tiled = jax.block_until_ready(
        gcn_encoder_forward(a_hat, features, params, k_drop,
                            dropout_p=DROPOUT, row_tile=16))
    assert jnp.allclose(out, out_tiled, atol=1e-3, rtol=1e-3)

    print("KERNEL_OK")
</pallas_src>

<mosaic_0001>
module attributes {stable_mosaic.version = 11 : i64} {
  func.func @fused_gcn_kernel(%arg0: i32, %arg1: i32, %arg2: memref<64x64xbf16, #tpu.memory_space<vmem>>, %arg3: memref<64x128xf32, #tpu.memory_space<vmem>>, %arg4: memref<1x128x128xf32, #tpu.memory_space<vmem>>, %arg5: memref<1x1x128xf32, #tpu.memory_space<vmem>>, %arg6: memref<1x64x128xf32, #tpu.memory_space<vmem>>, %arg7: memref<64x128xf32, #tpu.memory_space<vmem>>, %arg8: memref<64x128xf32, #tpu.memory_space<vmem>>, %arg9: memref<64x128xf32, #tpu.memory_space<vmem>>) attributes {dimension_semantics = [#tpu.dimension_semantics<arbitrary>, #tpu.dimension_semantics<arbitrary>], iteration_bounds = array<i64: 3, 1>, scalar_prefetch = 0 : i64, scratch_operands = 2 : i64, tpu.core_type = #tpu.core_type<tc>, window_params = [{transform_indices = @transform_0, window_bounds = array<i64: 64, 64>}, {pipeline_mode = #tpu.pipeline_mode<synchronous>, transform_indices = @transform_1, window_bounds = array<i64: 64, 128>}, {transform_indices = @transform_2, window_bounds = array<i64: 1, 128, 128>}, {transform_indices = @transform_3, window_bounds = array<i64: 1, 1, 128>}, {transform_indices = @transform_4, window_bounds = array<i64: 1, 64, 128>}, {pipeline_mode = #tpu.pipeline_mode<synchronous>, transform_indices = @transform_5, window_bounds = array<i64: 64, 128>}]} {
    %c0_i32 = arith.constant 0 : i32
    %0 = arith.cmpi eq, %arg0, %c0_i32 : i32
    %c0_i32_0 = arith.constant 0 : i32
    %1 = arith.cmpi eq, %arg1, %c0_i32_0 : i32
    %2 = arith.andi %0, %1 : i1
    %3 = arith.extui %2 : i1 to i32
    %c0_i32_1 = arith.constant 0 : i32
    %4 = arith.cmpi ne, %3, %c0_i32_1 : i32
    scf.if %4 {
      %c0_13 = arith.constant 0 : index
      %c0_14 = arith.constant 0 : index
      %24 = vector.load %arg3[%c0_13, %c0_14] : memref<64x128xf32, #tpu.memory_space<vmem>>, vector<64x128xf32>
      %c0_15 = arith.constant 0 : index
      %c0_16 = arith.constant 0 : index
      %25 = vector.load %arg8[%c0_15, %c0_16] : memref<64x128xf32, #tpu.memory_space<vmem>>, vector<64x128xf32>
      tpu.vector_store %arg8[%c0_15, %c0_16], %24 {strides = array<i32>} : memref<64x128xf32, #tpu.memory_space<vmem>>, vector<64x128xf32>,
    } else {
    }
    %c0_i32_2 = arith.constant 0 : i32
    %5 = arith.cmpi eq, %arg1, %c0_i32_2 : i32
    %6 = arith.extui %5 : i1 to i32
    %c0_i32_3 = arith.constant 0 : i32
    %7 = arith.cmpi ne, %6, %c0_i32_3 : i32
    scf.if %7 {
      %c0_13 = arith.constant 0 : index
      %c0_14 = arith.constant 0 : index
      %24 = vector.load %arg8[%c0_13, %c0_14] : memref<64x128xf32, #tpu.memory_space<vmem>>, vector<64x128xf32>
      %c0_15 = arith.constant 0 : index
      %c0_16 = arith.constant 0 : index
      %c0_17 = arith.constant 0 : index
      %25 = vector.load %arg6[%c0_15, %c0_16, %c0_17] : memref<1x64x128xf32, #tpu.memory_space<vmem>>, vector<1x64x128xf32>
      %26 = vector.shape_cast %25 : vector<1x64x128xf32> to vector<64x128xf32>
      %27 = arith.mulf %24, %26 : vector<64x128xf32>
      %c0_18 = arith.constant 0 : index
      %c0_19 = arith.constant 0 : index
      %c0_20 = arith.constant 0 : index
      %28 = vector.load %arg4[%c0_18, %c0_19, %c0_20] : memref<1x128x128xf32, #tpu.memory_space<vmem>>, vector<1x128x128xf32>
      %29 = vector.shape_cast %28 : vector<1x128x128xf32> to vector<128x128xf32>
      %cst_21 = arith.constant dense<0.000000e+00> : vector<64x128xf32>
      %30 = tpu.matmul %27, %29, %cst_21 {dimension_numbers = #tpu.dot_dimension_numbers<[1], [0], [0], [1], [0, 0, 1, 1], [], []>} : vector<64x128xf32>, vector<128x128xf32>, vector<64x128xf32> -> vector<64x128xf32>
      %c0_22 = arith.constant 0 : index
      %c0_23 = arith.constant 0 : index
      %31 = vector.load %arg9[%c0_22, %c0_23] : memref<64x128xf32, #tpu.memory_space<vmem>>, vector<64x128xf32>
      tpu.vector_store %arg9[%c0_22, %c0_23], %30 {strides = array<i32>} : memref<64x128xf32, #tpu.memory_space<vmem>>, vector<64x128xf32>,
    } else {
    }
    %c0 = arith.constant 0 : index
    %c0_4 = arith.constant 0 : index
    %8 = vector.load %arg2[%c0, %c0_4] : memref<64x64xbf16, #tpu.memory_space<vmem>>, vector<64x64xbf16>
    %c0_5 = arith.constant 0 : index
    %c0_6 = arith.constant 0 : index
    %9 = vector.load %arg9[%c0_5, %c0_6] : memref<64x128xf32, #tpu.memory_space<vmem>>, vector<64x128xf32>
    %10 = arith.truncf %9 : vector<64x128xf32> to vector<64x128xbf16>
    %cst = arith.constant dense<0.000000e+00> : vector<64x128xf32>
    %11 = tpu.matmul %8, %10, %cst {dimension_numbers = #tpu.dot_dimension_numbers<[1], [0], [0], [1], [0, 0, 1, 1], [], []>} : vector<64x64xbf16>, vector<64x128xbf16>, vector<64x128xf32> -> vector<64x128xf32>
    %c0_7 = arith.constant 0 : index
    %c0_8 = arith.constant 0 : index
    %c0_9 = arith.constant 0 : index
    %12 = vector.load %arg5[%c0_7, %c0_8, %c0_9] : memref<1x1x128xf32, #tpu.memory_space<vmem>>, vector<1x1x128xf32>
    %13 = vector.shape_cast %12 : vector<1x1x128xf32> to vector<1x128xf32>
    %14 = vector.broadcast %13 : vector<1x128xf32> to vector<64x128xf32>
    %15 = arith.addf %11, %14 : vector<64x128xf32>
    %cst_10 = arith.constant 0.000000e+00 : f32
    %16 = vector.broadcast %cst_10 : f32 to vector<64x128xf32>
    %17 = arith.maximumf %15, %16 : vector<64x128xf32>
    %c64_i32 = arith.constant 64 : i32
    %18 = arith.muli %arg1, %c64_i32 : i32
    %19 = arith.index_cast %18 : i32 to index
    %c0_11 = arith.constant 0 : index
    %20 = vector.load %arg8[%19, %c0_11] : memref<64x128xf32, #tpu.memory_space<vmem>>, vector<64x128xf32>
    tpu.vector_store %arg8[%19, %c0_11], %17 {strides = array<i32>} : memref<64x128xf32, #tpu.memory_space<vmem>>, vector<64x128xf32>,
    %c2_i32 = arith.constant 2 : i32
    %21 = arith.cmpi eq, %arg0, %c2_i32 : i32
    %22 = arith.extui %21 : i1 to i32
    %c0_i32_12 = arith.constant 0 : i32
    %23 = arith.cmpi ne, %22, %c0_i32_12 : i32
    scf.if %23 {
      %24 = arith.index_cast %18 : i32 to index
      %c0_13 = arith.constant 0 : index
      %25 = vector.load %arg7[%24, %c0_13] : memref<64x128xf32, #tpu.memory_space<vmem>>, vector<64x128xf32>
      tpu.vector_store %arg7[%24, %c0_13], %17 {strides = array<i32>} : memref<64x128xf32, #tpu.memory_space<vmem>>, vector<64x128xf32>,
    } else {
    }
    return
  }
  func.func @transform_0(%arg0: i32, %arg1: i32) -> (i32, i32) {
    %c0_i32 = arith.constant 0 : i32
    %c0_i32_0 = arith.constant 0 : i32
    return %arg1, %c0_i32 : i32, i32
  }
  func.func @transform_1(%arg0: i32, %arg1: i32) -> (i32, i32) {
    %c0_i32 = arith.constant 0 : i32
    %c0_i32_0 = arith.constant 0 : i32
    %c0_i32_1 = arith.constant 0 : i32
    return %c0_i32, %c0_i32_0 : i32, i32
  }
  func.func @transform_2(%arg0: i32, %arg1: i32) -> (i32, i32, i32) {
    %c0_i32 = arith.constant 0 : i32
    %c0_i32_0 = arith.constant 0 : i32
    %c0_i32_1 = arith.constant 0 : i32
    return %arg0, %c0_i32, %c0_i32_0 : i32, i32, i32
  }
  func.func @transform_3(%arg0: i32, %arg1: i32) -> (i32, i32, i32) {
    %c0_i32 = arith.constant 0 : i32
    %c0_i32_0 = arith.constant 0 : i32
    %c0_i32_1 = arith.constant 0 : i32
    return %arg0, %c0_i32, %c0_i32_0 : i32, i32, i32
  }
  func.func @transform_4(%arg0: i32, %arg1: i32) -> (i32, i32, i32) {
    %c0_i32 = arith.constant 0 : i32
    %c0_i32_0 = arith.constant 0 : i32
    %c0_i32_1 = arith.constant 0 : i32
    return %arg0, %c0_i32, %c0_i32_0 : i32, i32, i32
  }
  func.func @transform_5(%arg0: i32, %arg1: i32) -> (i32, i32) {
    %c0_i32 = arith.constant 0 : i32
    %c0_i32_0 = arith.constant 0 : i32
    %c0_i32_1 = arith.constant 0 : i32
    return %c0_i32, %c0_i32_0 : i32, i32
  }
}

</mosaic_0001>

<bundles_post_ra>
// kernel: gcn_encoder_forward.1
= control target key start
LH: loop header
LB: loop body
LE: loop exit
PB: predicated region body
PF: predicated region fallthrough
CT: control target
= control target key end

     0   :  { %s921_s18 = smov 0   ;;  %s923_s19 = smov 0   ;;  %s1065_s0 = inlined_call_operand.vmem [shape: bf16[64,64], index: 0, kind: input, shape index: {}]   ;;  %s1066_s1 = inlined_call_operand.vmem [shape: f32[64,128], index: 1, kind: input, shape index: {}]   ;;  %s1067_s2 = inlined_call_operand.vmem [shape: f32[3,128,128], index: 2, kind: input, shape index: {}]   ;;  %s1068_s3 = inlined_call_operand.vmem [shape: f32[3,1,128], index: 3, kind: input, shape index: {}]   ;;  %s1069_s4 = inlined_call_operand.vmem [shape: f32[3,64,128], index: 4, kind: input, shape index: {}]   ;;  %s1070_s5 = inlined_call_operand.vmem [shape: f32[64,128], index: 5, kind: output, shape index: {}]  }
   0x1   :  { %s925_s20 = smov 0  }
   0x2 LB: > { %s27_s21 = sadd.s32 1, %s885_s19  ;;  %p694_p0 = scmp.ge.s32.totalorder %s889_s20, 1  ;;  %s889_s20 = sphi %s925_s20, %s15_s20   ;;  %s885_s19 = sphi %s923_s19, %s1072_s19   ;;  %s881_s18 = sphi %s921_s18, %s1071_s18  }
   0x3   : > { %p29_p1 = scmp.ge.s32.totalorder %s27_s21, 3  ;;  %p223_p2 = scmp.lt.s32.totalorder %s889_s20, 4 }
   0x5   : > { %s1074_s21 = smov (%p29_p1, %s27_s21), 0  ;;  %p224_p3 = pnand %p694_p0, %p223_p2 }
   0x6   : > { %p265_p4 = scmp.lt.s32.totalorder (!%p224_p3), %s881_s18, 2  ;;  %p279_p5 = scmp.eq.s32.totalorder (!%p224_p3), %s881_s18, 0 }
   0x7   : > { %227 = sbr.rel (%p224_p3) target bundleno = 516 (0x204), region = 40 }
   0xe   : > { %s944_s22 = scalar_select %p265_p4, %s881_s18, 2 }
   0xf   : > { %284 = sbr.rel (!%p279_p5) target bundleno = 22 (0x16), region = 44  ;;  %v285_v0 = vld [vmem:[%s1066_s1] sm:$0xff] (%p279_p5)  ;;  %v286_v1 = vld [vmem:[%s1066_s1 + $0x8] sm:$0xff] (%p279_p5)  ;;  %v287_v2 = vld [vmem:[%s1066_s1 + $0x10] sm:$0xff] (%p279_p5) }
  0x10   : > { %s712_s23 = sshll.u32 %s944_s22, 7  ;;  %s272_s26 = scalar_lea.vmem %s1068_s3, %s944_s22  ;;  %293 = vst [vmem:[#allocation2] sm:$0xff] (%p279_p5), %v285_v0  ;;  %294 = vst [vmem:[#allocation2 + $0x8] sm:$0xff] (%p279_p5), %v286_v1  ;;  %v288_v3 = vld [vmem:[%s1066_s1 + $0x18] sm:$0xff] (%p279_p5)  ;;  %v289_v4 = vld [vmem:[%s1066_s1 + $0x20] sm:$0xff] (%p279_p5) }
  0x11   : > { %s954_s29 = scalar_lea.vmem %s1067_s2, %s712_s23  ;;  %s713_s30 = sshll.u32 %s944_s22, 6  ;;  %295 = vst [vmem:[#allocation2 + $0x10] sm:$0xff] (%p279_p5), %v287_v2  ;;  %v290_v5 = vld [vmem:[%s1066_s1 + $0x28] sm:$0xff] (%p279_p5)  ;;  %296 = vst [vmem:[#allocation2 + $0x18] sm:$0xff] (%p279_p5), %v288_v3  ;;  %v291_v6 = vld [vmem:[%s1066_s1 + $0x30] sm:$0xff] (%p279_p5) }
  0x12   : > { %s960_s8 = scalar_lea.vmem %s1069_s4, %s713_s30  ;;  %297 = vst [vmem:[#allocation2 + $0x20] sm:$0xff] (%p279_p5), %v289_v4  ;;  %298 = vst [vmem:[#allocation2 + $0x28] sm:$0xff] (%p279_p5), %v290_v5  ;;  %v292_v7 = vld [vmem:[%s1066_s1 + $0x38] sm:$0xff] (%p279_p5) }
  0x13   : > { %299 = vst [vmem:[#allocation2 + $0x30] sm:$0xff] (%p279_p5), %v291_v6  ;;  %300 = vst [vmem:[#allocation2 + $0x38] sm:$0xff] (%p279_p5), %v292_v7 }
  0x16 PF: > { %v328_v8 = vld [vmem:[%s954_s29] sm:$0xff]  ;;  %v329_v9 = vld [vmem:[%s954_s29 + $0x8] sm:$0xff]  ;;  %v330_v10 = vld [vmem:[%s954_s29 + $0x10] sm:$0xff]  ;;  %vm504_vm0 = vcmask 523264   ;;  %p709_p6 = scmp.ne.s32.totalorder %s881_s18, 2 }
  0x17   : > { %v807_v11 = vpack.c.bf16 %v329_v9, %v328_v8  ;;  %v331_v12 = vld [vmem:[%s954_s29 + $0x18] sm:$0xff]  ;;  %v332_v14 = vld [vmem:[%s954_s29 + $0x20] sm:$0xff]  ;;  %v333_v15 = vld [vmem:[%s954_s29 + $0x28] sm:$0xff] }
  0x18   : > { %v811_v13 = vpack.c.bf16 %v331_v12, %v330_v10  ;;  %v815_v16 = vpack.c.bf16 %v333_v15, %v332_v14  ;;  %v304_v17 = vld [vmem:[#allocation2] sm:$0xff]  ;;  %v334_v19 = vld [vmem:[%s954_s29 + $0x30] sm:$0xff]  ;;  %v335_v20 = vld [vmem:[%s954_s29 + $0x38] sm:$0xff] }
  0x19   : > { %808 = vmatprep.subr.bf16.mxu0 %v807_v11  ;;  %v312_v18 = vld [vmem:[%s960_s8] sm:$0xff]  ;;  %v819_v22 = vpack.c.bf16 %v335_v20, %v334_v19  ;;  %v337_v24 = vld [vmem:[%s954_s29 + $0x48] sm:$0xff]  ;;  %v338_v26 = vld [vmem:[%s954_s29 + $0x50] sm:$0xff] }
  0x1a   : > { %810 = vmatpush3.bf16.msra.mxu0 %v807_v11  ;;  %v320_v21 = vmul.f32 %v312_v18, %v304_v17  ;;  %v336_v23 = vld [vmem:[%s954_s29 + $0x40] sm:$0xff]  ;;  %v339_v27 = vld [vmem:[%s954_s29 + $0x58] sm:$0xff]  ;;  %v341_v30 = vld [vmem:[%s954_s29 + $0x68] sm:$0xff] }
  0x1b   : > { %812 = vmatprep.subr.bf16.mxu0 %v811_v13  ;;  %v823_v25 = vpack.c.bf16 %v337_v24, %v336_v23  ;;  %v827_v28 = vpack.c.bf16 %v339_v27, %v338_v26  ;;  %v340_v29 = vld [vmem:[%s954_s29 + $0x60] sm:$0xff]  ;;  %v342_v32 = vld [vmem:[%s954_s29 + $0x70] sm:$0xff]  ;;  %v343_v33 = vld [vmem:[%s954_s29 + $0x78] sm:$0xff] }
  0x1c   : > { %779 = vmatprep.mubr.f32.mxu0 %v320_v21  ;;  %v831_v31 = vpack.c.bf16 %v341_v30, %v340_v29  ;;  %v835_v34 = vpack.c.bf16 %v343_v33, %v342_v32  ;;  %v305_v35 = vld [vmem:[#allocation2 + $0x8] sm:$0xff]  ;;  %v306_v37 = vld [vmem:[#allocation2 + $0x10] sm:$0xff]  ;;  %v307_v41 = vld [vmem:[#allocation2 + $0x18] sm:$0xff] }
  0x1d   : > { %v313_v36 = vld [vmem:[%s960_s8 + $0x8] sm:$0xff]  ;;  %v314_v38 = vld [vmem:[%s960_s8 + $0x10] sm:$0xff]  ;;  %v315_v42 = vld [vmem:[%s960_s8 + $0x18] sm:$0xff] }
  0x1e   : > { %814 = vmatpush3.bf16.msra.mxu0 %v811_v13  ;;  %v321_v39 = vmul.f32 %v313_v36, %v305_v35  ;;  %v322_v40 = vmul.f32 %v314_v38, %v306_v37  ;;  %v308_v43 = vld [vmem:[#allocation2 + $0x20] sm:$0xff]  ;;  %v323_v45 = vmul.f32 %v315_v42, %v307_v41  ;;  %v309_v47 = vld [vmem:[#allocation2 + $0x28] sm:$0xff]  ;;  %v310_v49 = vld [vmem:[#allocation2 + $0x30] sm:$0xff] }
  0x1f   : > { %816 = vmatprep.subr.bf16.mxu0 %v815_v16  ;;  %v316_v44 = vld [vmem:[%s960_s8 + $0x20] sm:$0xff]  ;;  %v317_v48 = vld [vmem:[%s960_s8 + $0x28] sm:$0xff]  ;;  %v318_v50 = vld [vmem:[%s960_s8 + $0x30] sm:$0xff] }
  0x20   : > { %v324_v46 = vmul.f32 %v316_v44, %v308_v43  ;;  %v325_v51 = vmul.f32 %v317_v48, %v309_v47  ;;  %v326_v52 = vmul.f32 %v318_v50, %v310_v49  ;;  %v311_v53 = vld [vmem:[#allocation2 + $0x38] sm:$0xff]  ;;  %v863_v56 = vld [vmem:[%s1065_s0] sm:$0xff]   ;;  %v864_v5 = vld [vmem:[%s1065_s0 + $0x8] sm:$0xff]  }
  0x21   : > { %v319_v54 = vld [vmem:[%s960_s8 + $0x38] sm:$0xff]  ;;  %799 = vmatprep.mubr.msk.bf16.mxu1 %vm504_vm0, %v863_v56  ;;  %v865_v6 = vld [vmem:[%s1065_s0 + $0x10] sm:$0xff]   ;;  %v700_v8 = vld [vmem:[%s272_s26] ss:$0 sm:$0xff] }
  0x22   : > { %818 = vmatpush3.bf16.msra.mxu0 %v815_v16  ;;  %v327_v55 = vmul.f32 %v319_v54, %v311_v53  ;;  %v866_v7 = vld [vmem:[%s1065_s0 + $0x18] sm:$0xff]  }
  0x23   : > { %820 = vmatprep.subr.bf16.mxu0 %v819_v22 }
  0x26   : > { %822 = vmatpush3.bf16.msra.mxu0 %v819_v22 }
  0x27   : > { %824 = vmatprep.subr.bf16.mxu0 %v823_v25 }
  0x2a   : > { %826 = vmatpush3.bf16.msra.mxu0 %v823_v25 }
  0x2b   : > { %828 = vmatprep.subr.bf16.mxu0 %v827_v28 }
  0x2e   : > { %830 = vmatpush3.bf16.msra.mxu0 %v827_v28 }
  0x2f   : > { %832 = vmatprep.subr.bf16.mxu0 %v831_v31 }
  0x32   : > { %834 = vmatpush3.bf16.msra.mxu0 %v831_v31 }
  0x33   : > { %836 = vmatprep.subr.bf16.mxu0 %v835_v34 }
  0x36   : > { %838 = vmatpush3.bf16.msra.mxu0 %v835_v34 }
  0x39   : > { %780 = vmatmul.mubr.f32.vlgmr.msra.gmra.mrb[0].mxu0 %v321_v39 }
  0x3a   : > { %782 = vmatprep.mubr.f32.mxu0 %v322_v40 }
  0x3d   : > { %783 = vmatmul.mubr.f32.gmra.mrb[2].mxu0 %v323_v45 }
  0x3e   : > { %785 = vmatprep.mubr.f32.mxu0 %v324_v46 }
  0x41   : > { %786 = vmatmul.mubr.f32.gmra.mrb[4].mxu0 %v325_v51 }
  0x42   : > { %788 = vmatprep.mubr.f32.mxu0 %v326_v52 }
  0x45   : > { %789 = vmatmul.mubr.f32.gmra.mrb[6].mxu0 %v327_v55 }
 0x10c   : > { %v781_v57 = vpop.f32.mrb[0].mxu0 }
 0x10d   : > { %v410_v58 = vpop.f32.mrb[1].mxu0 }
 0x10e   : > { %v473_v59 = vpack.c.bf16 %v781_v57, %v410_v58 }
 0x110   : > { %v784_v60 = vpop.f32.mrb[2].mxu0  ;;  %791 = vmatprep.subr.bf16.mxu1 %v473_v59 }
 0x111   : > { %v420_v61 = vpop.f32.mrb[3].mxu0  ;;  %792 = vmatpush3.bf16.msra.mxu1 %v473_v59 }
 0x112   : > { %v474_v62 = vpack.c.bf16 %v784_v60, %v420_v61 }
 0x114   : > { %v787_v63 = vpop.f32.mrb[4].mxu0  ;;  %793 = vmatprep.subr.bf16.mxu1 %v474_v62 }
 0x115   : > { %v430_v0 = vpop.f32.mrb[5].mxu0  ;;  %794 = vmatpush3.bf16.msra.mxu1 %v474_v62 }
 0x116   : > { %v475_v1 = vpack.c.bf16 %v787_v63, %v430_v0 }
 0x118   : > { %v790_v2 = vpop.f32.mrb[6].mxu0  ;;  %795 = vmatprep.subr.bf16.mxu1 %v475_v1 }
 0x119   : > { %v440_v3 = vpop.f32.mrb[7].mxu0  ;;  %796 = vmatpush3.bf16.msra.mxu1 %v475_v1 }
 0x11a   : > { %v476_v4 = vpack.c.bf16 %v790_v2, %v440_v3 }
 0x11c   : > { %797 = vmatprep.subr.bf16.mxu1 %v476_v4 }
 0x11d   : > { %798 = vmatpush3.bf16.msra.mxu1 %v476_v4 }
 0x120   : > { %800 = vmatmul.mubr.msk.bf16.vlgmr.msra.gmra.mrb[0].mxu1 %vm504_vm0, %v864_v5 }
 0x121   : > { %803 = vmatprep.mubr.msk.bf16.mxu1 %vm504_vm0, %v865_v6 }
 0x128   : > { %804 = vmatmul.mubr.msk.bf16.gmra.mrb[4].mxu1 %vm504_vm0, %v866_v7 }
 0x1f3   : > { %v801_v9 = vpop.f32.mrb[0].mxu1 }
 0x1f4   : > { %v560_v10 = vadd.f32 %v801_v9, %v700_v8  ;;  %v551_v11 = vpop.f32.mrb[1].mxu1 }
 0x1f5   : > { %v552_v12 = vadd.f32 %v700_v8, %v551_v11  ;;  %v802_v13 = vpop.f32.mrb[2].mxu1 }
 0x1f6   : > { %v584_v14 = vmax.f32 %v560_v10, 0.0  ;;  %v563_v15 = vadd.f32 %v802_v13, %v700_v8  ;;  %v554_v16 = vpop.f32.mrb[3].mxu1 }
 0x1f7   : > { %v582_v17 = vmax.f32 %v552_v12, 0.0  ;;  %v555_v18 = vadd.f32 %v700_v8, %v554_v16 }
 0x1f8   : > { %594 = vst [vmem:[#allocation2 + $0x10] sm:$0xff] %v584_v14  ;;  %v585_v19 = vmax.f32 %v563_v15, 0.0  ;;  %607 = vst [vmem:[%s1070_s5 + $0x10] sm:$0xff] (!%p709_p6), %v584_v14 }
 0x1f9   : > { %592 = vst [vmem:[#allocation2] sm:$0xff] %v582_v17  ;;  %v583_v20 = vmax.f32 %v555_v18, 0.0  ;;  %605 = vst [vmem:[%s1070_s5] sm:$0xff] (!%p709_p6), %v582_v17 }
 0x1fa   : > { %595 = vst [vmem:[#allocation2 + $0x18] sm:$0xff] %v585_v19  ;;  %608 = vst [vmem:[%s1070_s5 + $0x18] sm:$0xff] (!%p709_p6), %v585_v19 }
 0x1fb   : > { %593 = vst [vmem:[#allocation2 + $0x8] sm:$0xff] %v583_v20  ;;  %v805_v21 = vpop.f32.mrb[4].mxu1  ;;  %606 = vst [vmem:[%s1070_s5 + $0x8] sm:$0xff] (!%p709_p6), %v583_v20 }
 0x1fc   : > { %v576_v22 = vadd.f32 %v805_v21, %v700_v8  ;;  %v567_v23 = vpop.f32.mrb[5].mxu1 }
 0x1fd   : > { %v568_v24 = vadd.f32 %v700_v8, %v567_v23  ;;  %v806_v25 = vpop.f32.mrb[6].mxu1  ;;  %603 = sbr.rel (%p709_p6) target bundleno = 516 (0x204), region = 52 }
 0x1fe   : > { %v588_v26 = vmax.f32 %v576_v22, 0.0  ;;  %v579_v27 = vadd.f32 %v806_v25, %v700_v8  ;;  %v570_v28 = vpop.f32.mrb[7].mxu1 }
 0x1ff   : > { %v586_v29 = vmax.f32 %v568_v24, 0.0  ;;  %v571_v30 = vadd.f32 %v700_v8, %v570_v28 }
 0x200   : > { %598 = vst [vmem:[#allocation2 + $0x30] sm:$0xff] %v588_v26  ;;  %v589_v31 = vmax.f32 %v579_v27, 0.0  ;;  %611 = vst [vmem:[%s1070_s5 + $0x30] sm:$0xff] (!%p709_p6), %v588_v26 }
 0x201   : > { %596 = vst [vmem:[#allocation2 + $0x20] sm:$0xff] %v586_v29  ;;  %v587_v32 = vmax.f32 %v571_v30, 0.0  ;;  %609 = vst [vmem:[%s1070_s5 + $0x20] sm:$0xff] (!%p709_p6), %v586_v29 }
 0x202   : > { %599 = vst [vmem:[#allocation2 + $0x38] sm:$0xff] %v589_v31  ;;  %612 = vst [vmem:[%s1070_s5 + $0x38] sm:$0xff] (!%p709_p6), %v589_v31 }
 0x203   : > { %597 = vst [vmem:[#allocation2 + $0x28] sm:$0xff] %v587_v32  ;;  %610 = vst [vmem:[%s1070_s5 + $0x28] sm:$0xff] (!%p709_p6), %v587_v32 }
 0x204 PF: > { %s15_s20 = sadd.s32 1, %s889_s20   ;;  %s1071_s18 = smov %s885_s19 }
 0x205   : > { %p12_p7 = scmp.ge.s32.totalorder %s15_s20, 5   ;;  %s1072_s19 = smov %s1074_s21 }
 0x207   :  { %14 = sbr.rel (!%p12_p7) target bundleno = 2 (0x2), region = 89 }

</bundles_post_ra>
